<compile_context>
chip_gen: v7x
topology: tpu7x:2x2x1
jax: 0.10.0
libtpu: 0.0.40
codegen_flags: <defaults>
</compile_context>

<pallas_src>
import jax
import jax.numpy as jnp
from jax.experimental import pallas as pl
from jax.experimental.pallas import tpu as pltpu


def _round_up(a, b):
    return ((a + b - 1) // b) * b


def embedding_sharing_kernel(idx_ref, wt_ref, ht_ref, out_ref):
    """One batch tile of the shared-embedding lookup.

    idx_ref : (2, TB)  int32; row 0 = user indices, row 1 = item indices.
    wt_ref  : (K, U)   W transposed (resident, constant index_map).
    ht_ref  : (K, I)   H transposed (resident, constant index_map).
    out_ref : (2K, TB) transposed output block (batch on the 128-lane axis).
    """
    idx = idx_ref[...]                      # (2, TB)
    u_idx = idx[0:1, :]                     # (1, TB)
    v_idx = idx[1:2, :]                     # (1, TB)
    wt = wt_ref[...]                        # (K, U)
    ht = ht_ref[...]                        # (K, I)

    num_users = wt.shape[1]
    num_items = ht.shape[1]
    tb = idx.shape[1]

    # One-hot gather matrices, one per table half: each index is compared only
    # against its own row range (half the VALU work of the fused-table OR).
    u_rows = jax.lax.broadcasted_iota(jnp.int32, (num_users, tb), 0)
    v_rows = jax.lax.broadcasted_iota(jnp.int32, (num_items, tb), 0)
    u_hot = (u_rows == u_idx).astype(wt.dtype)          # (U, TB)
    v_hot = (v_rows == v_idx).astype(ht.dtype)          # (I, TB)

    # Two small MXU launches (K live rows each), f32 accumulation.
    u_emb_t = jnp.dot(wt, u_hot, preferred_element_type=jnp.float32)   # (K, TB)
    v_emb_t = jnp.dot(ht, v_hot, preferred_element_type=jnp.float32)   # (K, TB)

    # Concatenate the halves in-register -> one full (2K, TB) unmasked store.
    out_ref[...] = jnp.concatenate([u_emb_t, v_emb_t], axis=0).astype(out_ref.dtype)


def make_embedding_sharing_tables(W, H, table_dtype=None):
    """Pre-transpose (and optionally down-cast) the embedding tables.

    Hoisted out of the per-call path: call once, reuse across forwards.
    table_dtype=jnp.bfloat16 halves table residency/DMA and doubles MXU
    throughput; accumulation stays f32 (only the weights round).
    """
    dt = W.dtype if table_dtype is None else table_dtype
    return W.T.astype(dt), H.T.astype(dt)


def embedding_sharing_forward(x, Wt, Ht, *, out_dtype=None, block_rows=512,
                              is_training=False):
    """Pallas equivalent of Embedding_Sharing.forward.

    x  : (N, 2) integer array; column 0 = user index, column 1 = item index.
    Wt : (K, num_users)  pre-transposed user table (make_embedding_sharing_tables).
    Ht : (K, num_items)  pre-transposed item table.
    Returns squeeze(z_emb) (and (U_emb, V_emb) when is_training), like PyTorch.
    """
    N = int(x.shape[0])
    K, num_users = Wt.shape
    _, num_items = Ht.shape
    out_dtype = jnp.dtype(Wt.dtype if out_dtype is None else out_dtype)

    # ---- batch tile selection ---------------------------------------------
    lane = 128
    tb = min(_round_up(block_rows, lane), _round_up(max(N, 1), lane))
    # VMEM guard (matters on v7x, 64 MiB physical): per-tile one-hot + iota
    # intermediates are ~8 B per (vocab row, batch column).
    budget = 24 * 1024 * 1024
    while tb > lane and (num_users + num_items) * tb * 8 > budget:
        tb -= lane
    n_pad = _round_up(max(N, 1), tb)
    grid = (n_pad // tb,)
    # (On v7x a grid with >= 2 steps lets the "parallel" batch axis shard over
    # both TensorCores; for tiny N the single-step grid is accepted.)

    # ---- lane-dense index block: (2, n_pad), row 0 users / row 1 items -----
    idx = x.T.astype(jnp.int32)                        # (2, N)
    idx = jnp.pad(idx, ((0, 0), (0, n_pad - N)))       # pad cols sliced off later

    # vmem limit: 64 MiB where physical VMEM allows (v5e/v6e have 128 MiB),
    # but never over-ask a 64 MiB-physical chip (v7x).
    try:
        vmem_cap = int(pltpu.get_tpu_info().vmem_capacity_bytes)
    except Exception:
        vmem_cap = 64 * 1024 * 1024
    vmem_limit = min(64 * 1024 * 1024, (3 * vmem_cap) // 4)

    out_t = pl.pallas_call(
        embedding_sharing_kernel,
        out_shape=jax.ShapeDtypeStruct((2 * K, n_pad), out_dtype),
        grid_spec=pltpu.PrefetchScalarGridSpec(
            num_scalar_prefetch=0,
            grid=grid,
            in_specs=[
                pl.BlockSpec((2, tb), lambda i: (0, i)),          # user+item indices
                pl.BlockSpec((K, num_users), lambda i: (0, 0)),   # W.T resident
                pl.BlockSpec((K, num_items), lambda i: (0, 0)),   # H.T resident
            ],
            out_specs=pl.BlockSpec((2 * K, tb), lambda i: (0, i)),
        ),
        compiler_params=pltpu.CompilerParams(
            dimension_semantics=("parallel",),
            vmem_limit_bytes=vmem_limit,
        ),
    )(idx, Wt, Ht)

    z_emb = out_t.T[:N]                 # (N, 2K); transpose is XLA layout plumbing
    u_emb = z_emb[:, :K]
    v_emb = z_emb[:, K:]
    z_out = jnp.squeeze(z_emb)          # torch.squeeze fidelity (N == 1 -> (2K,))

    if is_training:
        return z_out, u_emb, v_emb
    return z_out


if __name__ == "__main__":
    # Small synthetic problem consistent with the module's __init__.
    num_users = 64
    num_items = 128
    embedding_k = 4
    N = 16

    key = jax.random.PRNGKey(0)
    k_w, k_h, k_u, k_i = jax.random.split(key, 4)

    # nn.Embedding default init ~ N(0, 1)
    W = jax.random.normal(k_w, (num_users, embedding_k), dtype=jnp.float32)
    H = jax.random.normal(k_h, (num_items, embedding_k), dtype=jnp.float32)

    user_idx = jax.random.randint(k_u, (N, 1), 0, num_users, dtype=jnp.int32)
    item_idx = jax.random.randint(k_i, (N, 1), 0, num_items, dtype=jnp.int32)
    x = jnp.concatenate([user_idx, item_idx], axis=1)    # (N, 2)

    # Tables are transposed once, outside the per-call path.
    Wt, Ht = make_embedding_sharing_tables(W, H)
    z, u_emb, v_emb = embedding_sharing_forward(x, Wt, Ht, is_training=True)
    z = jax.block_until_ready(z)

    # Pure-JAX reference (embedding lookup + concat).
    z_ref = jnp.concatenate([W[x[:, 0]], H[x[:, 1]]], axis=1)
    assert z.shape == (N, 2 * embedding_k)
    assert jnp.allclose(z, z_ref, atol=1e-6), "z_emb mismatch vs reference"
    assert jnp.allclose(u_emb, W[x[:, 0]], atol=1e-6), "U_emb mismatch"
    assert jnp.allclose(v_emb, H[x[:, 1]], atol=1e-6), "V_emb mismatch"

    # Optional bf16-table path (half the table VMEM/DMA, 2x MXU throughput;
    # weights round to bf16, accumulation stays f32).
    Wt16, Ht16 = make_embedding_sharing_tables(W, H, table_dtype=jnp.bfloat16)
    z16 = embedding_sharing_forward(x, Wt16, Ht16, out_dtype=jnp.float32)
    z16 = jax.block_until_ready(z16)
    assert jnp.allclose(z16, z_ref, atol=5e-2), "bf16 z_emb mismatch vs reference"

    print("KERNEL_OK")
</pallas_src>

<mosaic_0001>
module attributes {stable_mosaic.version = 11 : i64} {
  func.func @embedding_sharing_kernel(%arg0: i32, %arg1: memref<2x128xi32, #tpu.memory_space<vmem>>, %arg2: memref<4x64xf32, #tpu.memory_space<vmem>>, %arg3: memref<4x128xf32, #tpu.memory_space<vmem>>, %arg4: memref<8x128xf32, #tpu.memory_space<vmem>>) attributes {dimension_semantics = [#tpu.dimension_semantics<parallel>], iteration_bounds = array<i64: 1>, scalar_prefetch = 0 : i64, scratch_operands = 0 : i64, tpu.core_type = #tpu.core_type<tc>, window_params = [{transform_indices = @transform_0, window_bounds = array<i64: 2, 128>}, {pipeline_mode = #tpu.pipeline_mode<synchronous>, transform_indices = @transform_1, window_bounds = array<i64: 4, 64>}, {pipeline_mode = #tpu.pipeline_mode<synchronous>, transform_indices = @transform_2, window_bounds = array<i64: 4, 128>}, {transform_indices = @transform_3, window_bounds = array<i64: 8, 128>}]} {
    %c0 = arith.constant 0 : index
    %c0_0 = arith.constant 0 : index
    %0 = vector.load %arg1[%c0, %c0_0] : memref<2x128xi32, #tpu.memory_space<vmem>>, vector<2x128xi32>
    %1 = vector.extract_strided_slice %0 {offsets = [0, 0], sizes = [1, 128], strides = [1, 1]} : vector<2x128xi32> to vector<1x128xi32>
    %2 = vector.extract_strided_slice %0 {offsets = [1, 0], sizes = [1, 128], strides = [1, 1]} : vector<2x128xi32> to vector<1x128xi32>
    %c0_1 = arith.constant 0 : index
    %c0_2 = arith.constant 0 : index
    %3 = vector.load %arg2[%c0_1, %c0_2] : memref<4x64xf32, #tpu.memory_space<vmem>>, vector<4x64xf32>
    %c0_3 = arith.constant 0 : index
    %c0_4 = arith.constant 0 : index
    %4 = vector.load %arg3[%c0_3, %c0_4] : memref<4x128xf32, #tpu.memory_space<vmem>>, vector<4x128xf32>
    %5 = tpu.iota {dimensions = array<i32: 0>} : vector<64x128xi32>
    %6 = tpu.iota {dimensions = array<i32: 0>} : vector<128x128xi32>
    %7 = vector.broadcast %1 : vector<1x128xi32> to vector<64x128xi32>
    %8 = arith.cmpi eq, %5, %7 : vector<64x128xi32>
    %9 = arith.extui %8 : vector<64x128xi1> to vector<64x128xi32>
    %10 = arith.sitofp %9 : vector<64x128xi32> to vector<64x128xf32>
    %11 = vector.broadcast %2 : vector<1x128xi32> to vector<128x128xi32>
    %12 = arith.cmpi eq, %6, %11 : vector<128x128xi32>
    %13 = arith.extui %12 : vector<128x128xi1> to vector<128x128xi32>
    %14 = arith.sitofp %13 : vector<128x128xi32> to vector<128x128xf32>
    %cst = arith.constant dense<0.000000e+00> : vector<4x128xf32>
    %15 = tpu.matmul %3, %10, %cst {dimension_numbers = #tpu.dot_dimension_numbers<[1], [0], [0], [1], [0, 0, 1, 1], [], []>} : vector<4x64xf32>, vector<64x128xf32>, vector<4x128xf32> -> vector<4x128xf32>
    %cst_5 = arith.constant dense<0.000000e+00> : vector<4x128xf32>
    %16 = tpu.matmul %4, %14, %cst_5 {dimension_numbers = #tpu.dot_dimension_numbers<[1], [0], [0], [1], [0, 0, 1, 1], [], []>} : vector<4x128xf32>, vector<128x128xf32>, vector<4x128xf32> -> vector<4x128xf32>
    %17 = tpu.concatenate %15, %16 in 0 : vector<4x128xf32>, vector<4x128xf32> -> vector<8x128xf32>
    %c0_6 = arith.constant 0 : index
    %c0_7 = arith.constant 0 : index
    %18 = vector.load %arg4[%c0_6, %c0_7] : memref<8x128xf32, #tpu.memory_space<vmem>>, vector<8x128xf32>
    tpu.vector_store %arg4[%c0_6, %c0_7], %17 {strides = array<i32>} : memref<8x128xf32, #tpu.memory_space<vmem>>, vector<8x128xf32>,
    return
  }
  func.func @transform_0(%arg0: i32) -> (i32, i32) {
    %c0_i32 = arith.constant 0 : i32
    %c0_i32_0 = arith.constant 0 : i32
    return %c0_i32, %arg0 : i32, i32
  }
  func.func @transform_1(%arg0: i32) -> (i32, i32) {
    %c0_i32 = arith.constant 0 : i32
    %c0_i32_0 = arith.constant 0 : i32
    %c0_i32_1 = arith.constant 0 : i32
    return %c0_i32, %c0_i32_0 : i32, i32
  }
  func.func @transform_2(%arg0: i32) -> (i32, i32) {
    %c0_i32 = arith.constant 0 : i32
    %c0_i32_0 = arith.constant 0 : i32
    %c0_i32_1 = arith.constant 0 : i32
    return %c0_i32, %c0_i32_0 : i32, i32
  }
  func.func @transform_3(%arg0: i32) -> (i32, i32) {
    %c0_i32 = arith.constant 0 : i32
    %c0_i32_0 = arith.constant 0 : i32
    return %c0_i32, %arg0 : i32, i32
  }
}

</mosaic_0001>

<bundles_post_ra>
// kernel: tpu_custom_call.1
= control target key start
LH: loop header
LB: loop body
LE: loop exit
PB: predicated region body
PF: predicated region fallthrough
CT: control target
= control target key end

     0   :  { %8 = vsyncpa [#allocation3], 0  ;;  %s678_s0 = inlined_call_operand.hbm [shape: s32[2,128], index: 0, kind: input, shape index: {}]   ;;  %s679_s1 = inlined_call_operand.hbm [shape: f32[4,64], index: 1, kind: input, shape index: {}]   ;;  %s680_s2 = inlined_call_operand.vmem [shape: f32[4,128], index: 2, kind: input, shape index: {}]   ;;  %s681_s3 = inlined_call_operand.hbm [shape: f32[8,128], index: 3, kind: output, shape index: {}]  }
   0x1   :  { %9 = vsyncpa [#allocation6], 0 }
   0x2   :  { %10 = vsyncpa [#allocation4], 0  ;;  %s549_s12 = smov [#allocation2]   ;;  %s550_s14 = smov [#allocation5]  }
   0x3   :  { %s17_s13 = sshll.u32 %s549_s12, 4  ;;  %s27_s15 = sshll.u32 %s550_s14, 4  ;;  %s18_s13 = int_to_ptr.vmem [resolvable:$true] %s17_s13  ;;  %s28_s15 = int_to_ptr.vmem [resolvable:$true] %s27_s15 }
   0x4   :  { %s477_s18 = scalar_lea.hbm %s678_s0, 32 }
   0x5   :  { %p478_p0 = scmp.ne.s32.totalorder %s678_s0, %s477_s18  ;;  %p481_p1 = scmp.lt.u32.totalorder %s477_s18, %s678_s0 }
   0x7   :  { %p483_p2 = pnand %p481_p1, %p478_p0 }
   0x9   :  { %486 = shalt.err (!%p483_p2)
}
   0xa   :  { %s487_s23 = scalar_lea.vmem %s18_s13, 32  ;;  %p492_p4 = scmp.lt.s32.totalorder %s18_s13, %s18_s13 }
   0xb   :  { %p488_p3 = scmp.ne.s32.totalorder %s18_s13, %s487_s23  ;;  %p493_p5 = scmp.lt.s32.totalorder %s487_s23, %s487_s23 }
   0xd   :  { %p494_p6 = por %p493_p5, %p492_p4 }
   0xf   :  { %p495_p7 = pnand %p494_p6, %p488_p3 }
  0x11   :  { %498 = shalt.err (!%p495_p7)
}
  0x12   :  { %20 = dma.hbm_to_vmem [thread:$0]  %s678_s0, 32, %s18_s13, [#allocation3]  }
  0x13   :  { %s499_s28 = scalar_lea.hbm %s679_s1, 64 }
  0x14   :  { %p500_p8 = scmp.ne.s32.totalorder %s679_s1, %s499_s28  ;;  %p503_p9 = scmp.lt.u32.totalorder %s499_s28, %s679_s1 }
  0x16   :  { %p505_p10 = pnand %p503_p9, %p500_p8 }
  0x18   :  { %508 = shalt.err (!%p505_p10)
}
  0x19   :  { %s509_s6 = scalar_lea.vmem %s28_s15, 64  ;;  %p514_p12 = scmp.lt.s32.totalorder %s28_s15, %s28_s15 }
  0x1a   :  { %p510_p11 = scmp.ne.s32.totalorder %s28_s15, %s509_s6  ;;  %p515_p13 = scmp.lt.s32.totalorder %s509_s6, %s509_s6 }
  0x1c   :  { %p516_p0 = por %p515_p13, %p514_p12 }
  0x1e   :  { %p517_p1 = pnand %p516_p0, %p510_p11 }
  0x20   :  { %520 = shalt.err (!%p517_p1)
}
  0x21   :  { %30 = dma.hbm_to_vmem [thread:$0]  %s679_s1, 64, %s28_s15, [#allocation6]  }
  0x22   :  { %543 = dma.done.wait [#allocation3], 32  }
  0x23   :  { %544 = vsyncadd [#allocation3], 4294967264 }
  0x24   :  { %545 = dma.done.wait [#allocation6], 64  }
  0x25   :  { %546 = vsyncadd [#allocation6], 4294967232  ;;  %v42_v0 = vlaneseq  ;;  %v551_v1 = vmov 0.0|0.0   ;;  %vm552_vm0 = vmmov 0   ;;  %v553_v3 = vmov 0.0   ;;  %s555_s9 = smov [#allocation7]  }
  0x26   :  { %446 = vmatprep.subr.bf16.mxu1 %v551_v1  ;;  %434 = vmatprep.subr.bf16.mxu0 %v551_v1  ;;  %v39_v9 = vld [vmem:[#allocation2] sm:$0x3]  ;;  %v554_v14 = vmov 1.0|1.0   ;;  %v40_v23 = vld [vmem:[#allocation5] sm:$0xf] }
  0x27   :  { %v602_v2 = vshrl.u32 %v42_v0, 7  ;;  %431 = vmatprep.mubr.msk.f32.mxu1 %vm552_vm0, %v553_v3  ;;  %396 = vmatprep.mubr.msk.f32.mxu0 %vm552_vm0, %v553_v3  ;;  %v41_v26 = vld [vmem:[%s680_s2] sm:$0xf]  ;;  %s295_s10 = sshll.u32 %s555_s9, 4  ;;  %s296_s10 = int_to_ptr.vmem [resolvable:$true] %s295_s10 }
  0x28   :  { %s521_s11 = scalar_lea.vmem %s296_s10, 128  ;;  %p526_p3 = scmp.lt.s32.totalorder %s296_s10, %s296_s10 }
  0x29   :  { %v89_v4 = vsub.s32 1, %v602_v2  ;;  %v44_v5 = vadd.s32 8, %v602_v2  ;;  %v45_v6 = vadd.s32 16, %v602_v2  ;;  %v46_v7 = vadd.s32 24, %v602_v2  ;;  %p522_p2 = scmp.ne.s32.totalorder %s296_s10, %s521_s11  ;;  %p527_p4 = scmp.lt.s32.totalorder %s521_s11, %s521_s11 }
  0x2a   :  { %v61_v8 = vsub.s32 0, %v602_v2  ;;  %v47_v11 = vadd.s32 32, %v602_v2  ;;  %v48_v12 = vadd.s32 40, %v602_v2  ;;  %v49_v15 = vadd.s32 48, %v602_v2 }
  0x2b   :  { %v609_v10 = vrot.slane %v39_v9, %v89_v4  ;;  %v50_v16 = vadd.s32 56, %v602_v2  ;;  %v51_v17 = vadd.s32 64, %v602_v2  ;;  %v52_v18 = vadd.s32 72, %v602_v2  ;;  %p528_p5 = por %p527_p4, %p526_p3 }
  0x2c   :  { %v62_v13 = vrot.slane %v39_v9, %v61_v8  ;;  %v53_v19 = vadd.s32 80, %v602_v2  ;;  %v54_v20 = vadd.s32 88, %v602_v2  ;;  %v55_v21 = vadd.s32 96, %v602_v2 }
  0x2d   :  { %vm91_vm1 = vcmp.eq.s32.totalorder %v602_v2, %v609_v10  ;;  %vm92_vm2 = vcmp.eq.s32.totalorder %v44_v5, %v609_v10  ;;  %vm93_vm3 = vcmp.eq.s32.totalorder %v45_v6, %v609_v10  ;;  %vm94_vm4 = vcmp.eq.s32.totalorder %v46_v7, %v609_v10  ;;  %p529_p6 = pnand %p528_p5, %p522_p2 }
  0x2e   :  { %vm447_vm5 = vmpackc.low %vm92_vm2, %vm91_vm1  ;;  %vm63_vm7 = vcmp.eq.s32.totalorder %v602_v2, %v62_v13  ;;  %vm64_vm8 = vcmp.eq.s32.totalorder %v44_v5, %v62_v13  ;;  %vm95_vm9 = vcmp.eq.s32.totalorder %v47_v11, %v609_v10  ;;  %vm96_vm10 = vcmp.eq.s32.totalorder %v48_v12, %v609_v10 }
  0x2f   :  { %448 = vmatpush3.bf16.msk.msra.mxu1 %vm447_vm5, %v554_v14  ;;  %vm450_vm6 = vmpackc.low %vm94_vm4, %vm93_vm3  ;;  %vm65_vm11 = vcmp.eq.s32.totalorder %v45_v6, %v62_v13  ;;  %vm66_vm12 = vcmp.eq.s32.totalorder %v46_v7, %v62_v13  ;;  %vm97_vm15 = vcmp.eq.s32.totalorder %v49_v15, %v609_v10  ;;  %vm98_vm0 = vcmp.eq.s32.totalorder %v50_v16, %v609_v10 }
  0x30   :  { %449 = vmatprep.subr.bf16.mxu1 %v551_v1  ;;  %vm435_vm13 = vmpackc.low %vm64_vm8, %vm63_vm7  ;;  %vm67_vm2 = vcmp.eq.s32.totalorder %v47_v11, %v62_v13  ;;  %vm68_vm3 = vcmp.eq.s32.totalorder %v48_v12, %v62_v13  ;;  %vm99_vm5 = vcmp.eq.s32.totalorder %v51_v17, %v609_v10  ;;  %vm69_vm8 = vcmp.eq.s32.totalorder %v49_v15, %v62_v13 }
  0x31   :  { %vm453_vm14 = vmpackc.low %vm96_vm10, %vm95_vm9  ;;  %436 = vmatpush3.bf16.msk.msra.mxu0 %vm435_vm13, %v554_v14  ;;  %vm70_vm9 = vcmp.eq.s32.totalorder %v50_v16, %v62_v13  ;;  %v56_v22 = vadd.s32 104, %v602_v2  ;;  %v57_v24 = vadd.s32 112, %v602_v2  ;;  %v58_v25 = vadd.s32 120, %v602_v2 }
  0x32   :  { %437 = vmatprep.subr.bf16.mxu0 %v551_v1  ;;  %vm438_vm1 = vmpackc.low %vm66_vm12, %vm65_vm11  ;;  %vm101_vm11 = vcmp.eq.s32.totalorder %v53_v19, %v609_v10  ;;  %vm102_vm12 = vcmp.eq.s32.totalorder %v54_v20, %v609_v10 }
  0x33   :  { %451 = vmatpush3.bf16.msk.msra.mxu1 %vm450_vm6, %v554_v14  ;;  %vm456_vm4 = vmpackc.low %vm98_vm0, %vm97_vm15  ;;  %vm100_vm6 = vcmp.eq.s32.totalorder %v52_v18, %v609_v10  ;;  %vm139_vm15 = vcmask 523264   ;;  %vm103_vm0 = vcmp.eq.s32.totalorder %v55_v21, %v609_v10 }
  0x34   :  { %452 = vmatprep.subr.bf16.mxu1 %v551_v1  ;;  %vm441_vm7 = vmpackc.low %vm68_vm3, %vm67_vm2  ;;  %vm105_vm3 = vcmp.eq.s32.totalorder %v57_v24, %v609_v10 }
  0x35   :  { %439 = vmatpush3.bf16.msk.msra.mxu0 %vm438_vm1, %v554_v14  ;;  %vm459_vm10 = vmpackc.low %vm100_vm6, %vm99_vm5  ;;  %vm104_vm1 = vcmp.eq.s32.totalorder %v56_v22, %v609_v10  ;;  %vm286_vm6 = vcmask 1043456  }
  0x36   :  { %440 = vmatprep.subr.bf16.mxu0 %v551_v1  ;;  %vm444_vm13 = vmpackc.low %vm70_vm9, %vm69_vm8 }
  0x37   :  { %454 = vmatpush3.bf16.msk.msra.mxu1 %vm453_vm14, %v554_v14  ;;  %vm462_vm14 = vmpackc.low %vm102_vm12, %vm101_vm11 }
  0x38   :  { %455 = vmatprep.subr.bf16.mxu1 %v551_v1  ;;  %vm465_vm2 = vmpackc.low %vm104_vm1, %vm103_vm0 }
  0x39   :  { %442 = vmatpush3.bf16.msk.msra.mxu0 %vm441_vm7, %v554_v14 }
  0x3a   :  { %443 = vmatprep.subr.bf16.mxu0 %v551_v1 }
  0x3b   :  { %457 = vmatpush3.bf16.msk.msra.mxu1 %vm456_vm4, %v554_v14  ;;  %vm106_vm4 = vcmp.eq.s32.totalorder %v58_v25, %v609_v10 }
  0x3c   :  { %458 = vmatprep.subr.bf16.mxu1 %v551_v1  ;;  %vm468_vm5 = vmpackc.low %vm106_vm4, %vm105_vm3 }
  0x3d   :  { %445 = vmatpush3.bf16.msk.msra.mxu0 %vm444_vm13, %v554_v14 }
  0x3f   :  { %460 = vmatpush3.bf16.msk.msra.mxu1 %vm459_vm10, %v554_v14 }
  0x40   :  { %461 = vmatprep.subr.bf16.mxu1 %v551_v1  ;;  %397 = vmatmul.mubr.msk.f32.vlgmr.msra.gmra.mrb[0].mxu0 %vm139_vm15, %v40_v23 }
  0x43   :  { %463 = vmatpush3.bf16.msk.msra.mxu1 %vm462_vm14, %v554_v14 }
  0x44   :  { %464 = vmatprep.subr.bf16.mxu1 %v551_v1 }
  0x47   :  { %466 = vmatpush3.bf16.msk.msra.mxu1 %vm465_vm2, %v554_v14 }
  0x48   :  { %467 = vmatprep.subr.bf16.mxu1 %v551_v1 }
  0x4b   :  { %469 = vmatpush3.bf16.msk.msra.mxu1 %vm468_vm5, %v554_v14 }
  0x4e   :  { %432 = vmatmul.mubr.f32.vlgmr.msra.gmra.mrb[0].mxu1 %v41_v26 }
 0x113   :  { %v209_v27 = vpop.f32.mrb[0].mxu0 }
 0x114   :  { %v398_v28 = vpop.f32.mrb[1].mxu0 }
 0x121   :  { %v279_v29 = vpop.f32.mrb[0].mxu1 }
 0x122   :  { %v284_v30 = vrot.slane %v279_v29, 4  ;;  %v433_v31 = vpop.f32.mrb[1].mxu1 }
 0x124   :  { %v287_v32 = vsel %vm286_vm6, %v209_v27, %v284_v30 }
 0x125   :  { %288 = vst [vmem:[#allocation7] sm:$0xff] %v287_v32 }
 0x126   :  { %532 = shalt.err (!%p529_p6)
}
 0x127   :  { %s533_s13 = scalar_lea.hbm %s681_s3, 128 }
 0x128   :  { %p534_p7 = scmp.ne.s32.totalorder %s681_s3, %s533_s13  ;;  %p537_p8 = scmp.lt.u32.totalorder %s533_s13, %s681_s3 }
 0x12a   :  { %p539_p9 = pnand %p537_p8, %p534_p7 }
 0x12c   :  { %542 = shalt.err (!%p539_p9)
}
 0x12d   :  { %298 = dma.vmem_to_hbm [thread:$0]  %s296_s10, 128, %s681_s3, [#allocation4]  }
 0x12e   :  { %547 = dma.done.wait [#allocation4], 128  }
 0x12f   :  { %548 = vsyncadd [#allocation4], 4294967168 }
 0x130   :  { %302 = vsyncpa [#allocation3], 1 }
 0x131   :  { %303 = vsyncpa [#allocation6], 1 }
 0x132   :  { %304 = vsyncpa [#allocation4], 1 }

</bundles_post_ra>
